<compile_context>
chip_gen: v6e
topology: v6e:2x2x1
jax: 0.10.0
libtpu: 0.0.40
codegen_flags: <defaults>
</compile_context>

<pallas_src>
import jax
import jax.numpy as jnp
from jax import lax
from jax.experimental import pallas as pl
from jax.experimental.pallas import tpu as pltpu


# ---------------- fused TABlock kernel (one grid step = one batch element) ----------
def _tablock_kernel(x_ref, xr_ref, wqt_ref, bq_ref, wk_ref, bk_ref, wv_ref, bv_ref,
                    o_ref):
    # x_ref:  (1, C, N) f32   -- this batch's x_b
    # xr_ref: (1, N, C) f32   -- flat (B, N, C) view of x (residual in permuted layout)
    # wqt:    (N, N)   bf16   -- (Wq * N^-0.5)^T  (scale folded in)
    # bq:     (1, N)   f32    -- bq * N^-0.5
    # wk/wv:  (N, N)   bf16
    # bk/bv:  (N, 1)   f32
    # o:      (1, N, C) f32   -- permuted-layout output (reinterpreted (B, C, N) outside)
    C = x_ref.shape[1]

    xb_bf = x_ref[0].astype(jnp.bfloat16)                        # (C, N)

    # q = x_b @ (Wq*scale)^T + bq*scale                          -> (C, N)
    q = jnp.dot(xb_bf, wqt_ref[...], preferred_element_type=jnp.float32) + bq_ref[...]
    # kT = Wk @ x_b^T + bk        (contract last dims)           -> (N, C)
    kT = lax.dot_general(wk_ref[...], xb_bf, (((1,), (1,)), ((), ())),
                         preferred_element_type=jnp.float32) + bk_ref[...]
    # vT = Wv @ x_b^T             (bias deferred to the end)     -> (N, C)
    vT = lax.dot_general(wv_ref[...], xb_bf, (((1,), (1,)), ((), ())),
                         preferred_element_type=jnp.float32)

    # attention scores s[c, d] = sum_n q[c, n] * k[d, n]         -> (C, C)
    s = jnp.dot(q.astype(jnp.bfloat16), kT.astype(jnp.bfloat16),
                preferred_element_type=jnp.float32)
    s = s - jnp.max(s, axis=-1, keepdims=True)
    e = jnp.exp(s)                                               # un-normalized probs
    e_bf = e.astype(jnp.bfloat16)

    # deferred softmax denominator as a lane-indexed row: l[0, c] = sum_d e[c, d]
    ones_row = jnp.ones((1, C), jnp.bfloat16)
    l_row = lax.dot_general(ones_row, e_bf, (((1,), (1,)), ((), ())),
                            preferred_element_type=jnp.float32)  # (1, C)
    inv_row = pl.reciprocal(l_row, approx=True)                  # (1, C)

    # yT_un[n, c] = sum_d vT[n, d] * e[c, d]                     -> (N, C)
    yT_un = lax.dot_general(vT.astype(jnp.bfloat16), e_bf, (((1,), (1,)), ((), ())),
                            preferred_element_type=jnp.float32)

    # normalize + deferred v-bias + fused residual, written in (N, C) layout
    o_ref[0] = (yT_un * inv_row + bv_ref[...] + xr_ref[0]).astype(o_ref.dtype)


def tablock(x, wq, bq, wk, bk, wv, bv):
    """TABlock forward. x: (B, C, N); Linear weights are (N, N), biases (N,)."""
    Bb, C, N = x.shape
    scale = N ** -0.5
    # Fold the attention scale into the q projection; cast weights to bf16 once.
    wqt = (wq * scale).T.astype(jnp.bfloat16)        # (N, N)
    bq_row = (bq * scale).reshape(1, N)              # f32
    wk_bf = wk.astype(jnp.bfloat16)                  # used as Wk @ x^T
    bk_col = bk.reshape(N, 1)
    wv_bf = wv.astype(jnp.bfloat16)                  # used as Wv @ x^T
    bv_col = bv.reshape(N, 1)

    # Residual in the permuted output layout: a free contiguous reshape (NOT a
    # transpose) -- exactly reproduces torch's transpose(1,2).reshape(B,C,N) semantics.
    # NOTE: x is streamed twice (as (B,C,N) and as this view); on v6e/v7x the duplicate
    # DMA hides behind the MXU work.
    xr = x.reshape(Bb, N, C)

    out = pl.pallas_call(
        _tablock_kernel,
        out_shape=jax.ShapeDtypeStruct((Bb, N, C), x.dtype),
        grid=(Bb,),
        in_specs=[
            pl.BlockSpec((1, C, N), lambda b: (b, 0, 0)),   # x_b
            pl.BlockSpec((1, N, C), lambda b: (b, 0, 0)),   # residual (permuted view)
            pl.BlockSpec((N, N), lambda b: (0, 0)),         # Wq^T * scale (resident)
            pl.BlockSpec((1, N), lambda b: (0, 0)),         # bq * scale   (resident)
            pl.BlockSpec((N, N), lambda b: (0, 0)),         # Wk           (resident)
            pl.BlockSpec((N, 1), lambda b: (0, 0)),         # bk           (resident)
            pl.BlockSpec((N, N), lambda b: (0, 0)),         # Wv           (resident)
            pl.BlockSpec((N, 1), lambda b: (0, 0)),         # bv           (resident)
        ],
        out_specs=pl.BlockSpec((1, N, C), lambda b: (b, 0, 0)),
        compiler_params=pltpu.CompilerParams(
            dimension_semantics=("parallel",),               # v7x: 2 TCs share the batch
            vmem_limit_bytes=32 * 1024 * 1024,               # above v5e's 16 MiB default
        ),
    )(x, xr, wqt, bq_row, wk_bf, bk_col, wv_bf, bv_col)

    # (B, N, C) -> (B, C, N) is a free reinterpretation of the contiguous buffer.
    return out.reshape(Bb, C, N)


# ---------------- pure-JAX reference (PyTorch semantics, f32) ----------------
def tablock_ref(x, wq, bq, wk, bk, wv, bv):
    Bb, C, N = x.shape
    hp = jax.lax.Precision.HIGHEST
    q = jnp.einsum("bcn,mn->bcm", x, wq, precision=hp) + bq
    k = jnp.einsum("bcn,mn->bcm", x, wk, precision=hp) + bk
    v = jnp.einsum("bcn,mn->bcm", x, wv, precision=hp) + bv
    attn = jnp.einsum("bcn,bdn->bcd", q, k, precision=hp) * (N ** -0.5)
    attn = jax.nn.softmax(attn, axis=-1)
    y = jnp.einsum("bcd,bdn->bcn", attn, v, precision=hp)
    y = jnp.transpose(y, (0, 2, 1)).reshape(Bb, C, N)
    return y + x


if __name__ == "__main__":
    Bb, C, N = 2, 128, 32          # (B, C, N) with dim = N; C != N exercises the layout trick
    keys = jax.random.split(jax.random.PRNGKey(0), 7)
    x = jax.random.normal(keys[0], (Bb, C, N), jnp.float32)
    s = (1.0 / N) ** 0.5
    wq = jax.random.normal(keys[1], (N, N), jnp.float32) * s
    wk = jax.random.normal(keys[2], (N, N), jnp.float32) * s
    wv = jax.random.normal(keys[3], (N, N), jnp.float32) * s
    bq = jax.random.normal(keys[4], (N,), jnp.float32) * 0.02
    bk = jax.random.normal(keys[5], (N,), jnp.float32) * 0.02
    bv = jax.random.normal(keys[6], (N,), jnp.float32) * 0.02

    fwd = jax.jit(tablock)
    out = fwd(x, wq, bq, wk, bk, wv, bv)
    jax.block_until_ready(out)

    ref = tablock_ref(x, wq, bq, wk, bk, wv, bv)
    assert out.shape == (Bb, C, N)
    assert bool(jnp.all(jnp.isfinite(out)))
    # bf16 MXU operands with f32 accumulation + approx-reciprocal softmax denominator:
    # expected max-abs error ~1e-2 vs the f32 reference.
    err = float(jnp.max(jnp.abs(out - ref)))
    assert err < 5e-2, f"max abs err vs reference: {err}"
    print("KERNEL_OK")
</pallas_src>

<mosaic_0001>
module attributes {stable_mosaic.version = 11 : i64} {
  func.func @_tablock_kernel(%arg0: i32, %arg1: memref<1x128x32xf32, #tpu.memory_space<vmem>>, %arg2: memref<1x32x128xf32, #tpu.memory_space<vmem>>, %arg3: memref<32x32xbf16, #tpu.memory_space<vmem>>, %arg4: memref<1x32xf32, #tpu.memory_space<vmem>>, %arg5: memref<32x32xbf16, #tpu.memory_space<vmem>>, %arg6: memref<32x1xf32, #tpu.memory_space<vmem>>, %arg7: memref<32x32xbf16, #tpu.memory_space<vmem>>, %arg8: memref<32x1xf32, #tpu.memory_space<vmem>>, %arg9: memref<1x32x128xf32, #tpu.memory_space<vmem>>) attributes {dimension_semantics = [#tpu.dimension_semantics<parallel>], iteration_bounds = array<i64: 2>, scalar_prefetch = 0 : i64, scratch_operands = 0 : i64, tpu.core_type = #tpu.core_type<tc>, window_params = [{transform_indices = @transform_0, window_bounds = array<i64: 1, 128, 32>}, {transform_indices = @transform_1, window_bounds = array<i64: 1, 32, 128>}, {pipeline_mode = #tpu.pipeline_mode<synchronous>, transform_indices = @transform_2, window_bounds = array<i64: 32, 32>}, {pipeline_mode = #tpu.pipeline_mode<synchronous>, transform_indices = @transform_3, window_bounds = array<i64: 1, 32>}, {pipeline_mode = #tpu.pipeline_mode<synchronous>, transform_indices = @transform_4, window_bounds = array<i64: 32, 32>}, {pipeline_mode = #tpu.pipeline_mode<synchronous>, transform_indices = @transform_5, window_bounds = array<i64: 32, 1>}, {pipeline_mode = #tpu.pipeline_mode<synchronous>, transform_indices = @transform_6, window_bounds = array<i64: 32, 32>}, {pipeline_mode = #tpu.pipeline_mode<synchronous>, transform_indices = @transform_7, window_bounds = array<i64: 32, 1>}, {transform_indices = @transform_8, window_bounds = array<i64: 1, 32, 128>}]} {
    %c0 = arith.constant 0 : index
    %c0_0 = arith.constant 0 : index
    %c0_1 = arith.constant 0 : index
    %0 = vector.load %arg1[%c0, %c0_0, %c0_1] : memref<1x128x32xf32, #tpu.memory_space<vmem>>, vector<1x128x32xf32>
    %1 = vector.shape_cast %0 : vector<1x128x32xf32> to vector<128x32xf32>
    %2 = arith.truncf %1 : vector<128x32xf32> to vector<128x32xbf16>
    %c0_2 = arith.constant 0 : index
    %c0_3 = arith.constant 0 : index
    %3 = vector.load %arg3[%c0_2, %c0_3] : memref<32x32xbf16, #tpu.memory_space<vmem>>, vector<32x32xbf16>
    %cst = arith.constant dense<0.000000e+00> : vector<128x32xf32>
    %4 = tpu.matmul %2, %3, %cst {dimension_numbers = #tpu.dot_dimension_numbers<[1], [0], [0], [1], [0, 0, 1, 1], [], []>} : vector<128x32xbf16>, vector<32x32xbf16>, vector<128x32xf32> -> vector<128x32xf32>
    %c0_4 = arith.constant 0 : index
    %c0_5 = arith.constant 0 : index
    %5 = vector.load %arg4[%c0_4, %c0_5] : memref<1x32xf32, #tpu.memory_space<vmem>>, vector<1x32xf32>
    %6 = vector.broadcast %5 : vector<1x32xf32> to vector<128x32xf32>
    %7 = arith.addf %4, %6 : vector<128x32xf32>
    %c0_6 = arith.constant 0 : index
    %c0_7 = arith.constant 0 : index
    %8 = vector.load %arg5[%c0_6, %c0_7] : memref<32x32xbf16, #tpu.memory_space<vmem>>, vector<32x32xbf16>
    %cst_8 = arith.constant dense<0.000000e+00> : vector<32x128xf32>
    %9 = tpu.matmul %8, %2, %cst_8 {dimension_numbers = #tpu.dot_dimension_numbers<[1], [1], [0], [0], [0, 0, 1, 0], [], []>} : vector<32x32xbf16>, vector<128x32xbf16>, vector<32x128xf32> -> vector<32x128xf32>
    %c0_9 = arith.constant 0 : index
    %c0_10 = arith.constant 0 : index
    %10 = vector.load %arg6[%c0_9, %c0_10] : memref<32x1xf32, #tpu.memory_space<vmem>>, vector<32x1xf32>
    %11 = vector.broadcast %10 : vector<32x1xf32> to vector<32x128xf32>
    %12 = arith.addf %9, %11 : vector<32x128xf32>
    %c0_11 = arith.constant 0 : index
    %c0_12 = arith.constant 0 : index
    %13 = vector.load %arg7[%c0_11, %c0_12] : memref<32x32xbf16, #tpu.memory_space<vmem>>, vector<32x32xbf16>
    %cst_13 = arith.constant dense<0.000000e+00> : vector<32x128xf32>
    %14 = tpu.matmul %13, %2, %cst_13 {dimension_numbers = #tpu.dot_dimension_numbers<[1], [1], [0], [0], [0, 0, 1, 0], [], []>} : vector<32x32xbf16>, vector<128x32xbf16>, vector<32x128xf32> -> vector<32x128xf32>
    %15 = arith.truncf %7 : vector<128x32xf32> to vector<128x32xbf16>
    %16 = arith.truncf %12 : vector<32x128xf32> to vector<32x128xbf16>
    %cst_14 = arith.constant dense<0.000000e+00> : vector<128x128xf32>
    %17 = tpu.matmul %15, %16, %cst_14 {dimension_numbers = #tpu.dot_dimension_numbers<[1], [0], [0], [1], [0, 0, 1, 1], [], []>} : vector<128x32xbf16>, vector<32x128xbf16>, vector<128x128xf32> -> vector<128x128xf32>
    %cst_15 = arith.constant dense<0xFF800000> : vector<128xf32>
    %18 = vector.multi_reduction <maximumf>, %17, %cst_15 [1] : vector<128x128xf32> to vector<128xf32>
    %19 = vector.shape_cast %18 : vector<128xf32> to vector<128x1xf32>
    %20 = vector.broadcast %19 : vector<128x1xf32> to vector<128x128xf32>
    %21 = arith.subf %17, %20 : vector<128x128xf32>
    %22 = math.exp %21 : vector<128x128xf32>
    %23 = arith.truncf %22 : vector<128x128xf32> to vector<128x128xbf16>
    %cst_16 = arith.constant 1.000000e+00 : bf16
    %24 = vector.broadcast %cst_16 : bf16 to vector<1x128xbf16>
    %cst_17 = arith.constant dense<0.000000e+00> : vector<1x128xf32>
    %25 = tpu.matmul %24, %23, %cst_17 {dimension_numbers = #tpu.dot_dimension_numbers<[1], [1], [0], [0], [0, 0, 1, 0], [], []>} : vector<1x128xbf16>, vector<128x128xbf16>, vector<1x128xf32> -> vector<1x128xf32>
    %26 = tpu.reciprocal %25 {approx = true} : vector<1x128xf32> -> vector<1x128xf32>
    %27 = arith.truncf %14 : vector<32x128xf32> to vector<32x128xbf16>
    %cst_18 = arith.constant dense<0.000000e+00> : vector<32x128xf32>
    %28 = tpu.matmul %27, %23, %cst_18 {dimension_numbers = #tpu.dot_dimension_numbers<[1], [1], [0], [0], [0, 0, 1, 0], [], []>} : vector<32x128xbf16>, vector<128x128xbf16>, vector<32x128xf32> -> vector<32x128xf32>
    %29 = vector.broadcast %26 : vector<1x128xf32> to vector<32x128xf32>
    %30 = arith.mulf %28, %29 : vector<32x128xf32>
    %c0_19 = arith.constant 0 : index
    %c0_20 = arith.constant 0 : index
    %31 = vector.load %arg8[%c0_19, %c0_20] : memref<32x1xf32, #tpu.memory_space<vmem>>, vector<32x1xf32>
    %32 = vector.broadcast %31 : vector<32x1xf32> to vector<32x128xf32>
    %33 = arith.addf %30, %32 : vector<32x128xf32>
    %c0_21 = arith.constant 0 : index
    %c0_22 = arith.constant 0 : index
    %c0_23 = arith.constant 0 : index
    %34 = vector.load %arg2[%c0_21, %c0_22, %c0_23] : memref<1x32x128xf32, #tpu.memory_space<vmem>>, vector<1x32x128xf32>
    %35 = vector.shape_cast %34 : vector<1x32x128xf32> to vector<32x128xf32>
    %36 = arith.addf %33, %35 : vector<32x128xf32>
    %c0_24 = arith.constant 0 : index
    %c0_25 = arith.constant 0 : index
    %c0_26 = arith.constant 0 : index
    %37 = vector.load %arg9[%c0_24, %c0_25, %c0_26] : memref<1x32x128xf32, #tpu.memory_space<vmem>>, vector<1x32x128xf32>
    %38 = vector.shape_cast %37 : vector<1x32x128xf32> to vector<32x128xf32>
    %39 = vector.shape_cast %36 : vector<32x128xf32> to vector<1x32x128xf32>
    tpu.vector_store %arg9[%c0_24, %c0_25, %c0_26], %39 {strides = array<i32>} : memref<1x32x128xf32, #tpu.memory_space<vmem>>, vector<1x32x128xf32>,
    return
  }
  func.func @transform_0(%arg0: i32) -> (i32, i32, i32) {
    %c0_i32 = arith.constant 0 : i32
    %c0_i32_0 = arith.constant 0 : i32
    %c0_i32_1 = arith.constant 0 : i32
    return %arg0, %c0_i32, %c0_i32_0 : i32, i32, i32
  }
  func.func @transform_1(%arg0: i32) -> (i32, i32, i32) {
    %c0_i32 = arith.constant 0 : i32
    %c0_i32_0 = arith.constant 0 : i32
    %c0_i32_1 = arith.constant 0 : i32
    return %arg0, %c0_i32, %c0_i32_0 : i32, i32, i32
  }
  func.func @transform_2(%arg0: i32) -> (i32, i32) {
    %c0_i32 = arith.constant 0 : i32
    %c0_i32_0 = arith.constant 0 : i32
    %c0_i32_1 = arith.constant 0 : i32
    return %c0_i32, %c0_i32_0 : i32, i32
  }
  func.func @transform_3(%arg0: i32) -> (i32, i32) {
    %c0_i32 = arith.constant 0 : i32
    %c0_i32_0 = arith.constant 0 : i32
    %c0_i32_1 = arith.constant 0 : i32
    return %c0_i32, %c0_i32_0 : i32, i32
  }
  func.func @transform_4(%arg0: i32) -> (i32, i32) {
    %c0_i32 = arith.constant 0 : i32
    %c0_i32_0 = arith.constant 0 : i32
    %c0_i32_1 = arith.constant 0 : i32
    return %c0_i32, %c0_i32_0 : i32, i32
  }
  func.func @transform_5(%arg0: i32) -> (i32, i32) {
    %c0_i32 = arith.constant 0 : i32
    %c0_i32_0 = arith.constant 0 : i32
    %c0_i32_1 = arith.constant 0 : i32
    return %c0_i32, %c0_i32_0 : i32, i32
  }
  func.func @transform_6(%arg0: i32) -> (i32, i32) {
    %c0_i32 = arith.constant 0 : i32
    %c0_i32_0 = arith.constant 0 : i32
    %c0_i32_1 = arith.constant 0 : i32
    return %c0_i32, %c0_i32_0 : i32, i32
  }
  func.func @transform_7(%arg0: i32) -> (i32, i32) {
    %c0_i32 = arith.constant 0 : i32
    %c0_i32_0 = arith.constant 0 : i32
    %c0_i32_1 = arith.constant 0 : i32
    return %c0_i32, %c0_i32_0 : i32, i32
  }
  func.func @transform_8(%arg0: i32) -> (i32, i32, i32) {
    %c0_i32 = arith.constant 0 : i32
    %c0_i32_0 = arith.constant 0 : i32
    %c0_i32_1 = arith.constant 0 : i32
    return %arg0, %c0_i32, %c0_i32_0 : i32, i32, i32
  }
}

</mosaic_0001>

<bundles_post_ra>
// kernel: tablock.1
= control target key start
LH: loop header
LB: loop body
LE: loop exit
PB: predicated region body
PF: predicated region fallthrough
CT: control target
= control target key end

     0   :  { %s1434_s27 = smov 0   ;;  %s1645_s0 = inlined_call_operand.vmem [shape: f32[2,128,32], index: 0, kind: input, shape index: {}]   ;;  %s1646_s1 = inlined_call_operand.vmem [shape: f32[2,32,128], index: 1, kind: input, shape index: {}]   ;;  %s1647_s2 = inlined_call_operand.vmem [shape: bf16[32,32], index: 2, kind: input, shape index: {}]   ;;  %s1648_s3 = inlined_call_operand.vmem [shape: f32[1,32], index: 3, kind: input, shape index: {}]   ;;  %s1649_s4 = inlined_call_operand.vmem [shape: bf16[32,32], index: 4, kind: input, shape index: {}]   ;;  %s1650_s5 = inlined_call_operand.vmem [shape: f32[32,1], index: 5, kind: input, shape index: {}]   ;;  %s1651_s6 = inlined_call_operand.vmem [shape: bf16[32,32], index: 6, kind: input, shape index: {}]   ;;  %s1652_s7 = inlined_call_operand.vmem [shape: f32[32,1], index: 7, kind: input, shape index: {}]   ;;  %s1653_s8 = inlined_call_operand.vmem [shape: f32[2,32,128], index: 8, kind: output, shape index: {}]  }
   0x1 LB: > { %s1085_s28 = sadd.s32 4294967295, %s1383_s27   ;;  %p1089_p0 = scmp.ge.s32.totalorder %s1383_s27, 1  ;;  %s1383_s27 = sphi %s1434_s27, %s18_s27  }
   0x2   : > { %p272_p1 = scmp.lt.s32.totalorder %s1383_s27, 3 }
   0x4   : > { %p273_p2 = pnand %p1089_p0, %p272_p1 }
   0x5   : > { %p311_p3 = scmp.lt.s32.totalorder (!%p273_p2), %s1085_s28, 1 }
   0x6   : > { %276 = sbr.rel (%p273_p2) target bundleno = 949 (0x3b5), region = 52 }
   0xb   : > { %v1337_v0 = vld [vmem:[%s1647_s2 + $0x8] sm:$0xff]   ;;  %s1655_s28 = smov (!%p311_p3, %s1085_s28), 1  ;;  %v1338_v1 = vld [vmem:[%s1647_s2] sm:$0xff]   ;;  %v1385_v2 = vmov 0   ;;  %vm375_vm0 = vcmask 261120   ;;  %v503_v4 = vld [vmem:[%s1650_s5 + $0x10] sm:$0xff] }
   0xc   : > { %1335 = vset.pattern.permute.xlu0 %v1385_v2  ;;  %1336 = vset.pattern.permute.xlu1 %v1385_v2  ;;  %v1339_v3 = vld [vmem:[%s1649_s4] sm:$0xff]   ;;  %s1125_s13 = sshll.u32 %s1655_s28, 7  ;;  %v504_v11 = vld [vmem:[%s1650_s5 + $0x18] sm:$0xff]  ;;  %v502_v13 = vld [vmem:[%s1650_s5 + $0x8] sm:$0xff]  ;;  %vm1387_vm1 = vmmov 0   ;;  %s1126_s21 = sshll.u32 %s1655_s28, 5 }
   0xd   : > { %1187 = vmatprep.subr.bf16.mxu0 %v1337_v0  ;;  %s1460_s18 = scalar_lea.vmem %s1645_s0, %s1125_s13  ;;  %1223 = vmatprep.mubr.msk.bf16.mxu1 %vm375_vm0, %v1339_v3  ;;  %v501_v5 = vld [vmem:[%s1650_s5] sm:$0xff]  ;;  %v1340_v40 = vld [vmem:[%s1649_s4 + $0x8] sm:$0xff]   ;;  %s320_s24 = scalar_lea.vmem %s1646_s1, %s1126_s21 }
   0xe   : > { %1188 = vmatpush3.bf16.msra.mxu0 %v1337_v0  ;;  %v342_v6 = vld [vmem:[%s1460_s18 + $0x70] sm:$0xff]  ;;  %v343_v7 = vld [vmem:[%s1460_s18 + $0x78] sm:$0xff]  ;;  %v340_v8 = vld [vmem:[%s1460_s18 + $0x60] sm:$0xff]  ;;  %517 = vperm.xlu0 %1335, %v503_v4   ;;  %s325_s26 = scalar_lea.vmem %s1653_s8, %s1126_s21 }
   0xf   : > { %1189 = vmatprep.subr.bf16.mxu0 %v1338_v1  ;;  %507 = vperm.xlu1 %1336, %v501_v5   ;;  %v351_v9 = vpack.c.bf16 %v343_v7, %v342_v6  ;;  %v341_v10 = vld [vmem:[%s1460_s18 + $0x68] sm:$0xff]  ;;  %v332_v15 = vld [vmem:[%s1460_s18 + $0x20] sm:$0xff]  ;;  %v330_v17 = vld [vmem:[%s1460_s18 + $0x10] sm:$0xff] }
  0x10   : > { %v350_v12 = vpack.c.bf16 %v341_v10, %v340_v8  ;;  %v333_v16 = vld [vmem:[%s1460_s18 + $0x28] sm:$0xff]  ;;  %v331_v18 = vld [vmem:[%s1460_s18 + $0x18] sm:$0xff]  ;;  %v328_v19 = vld [vmem:[%s1460_s18] sm:$0xff] }
  0x11   : > { %1307 = vmatprep.subr.msk.bf16.mxu1 %vm375_vm0, %v351_v9  ;;  %v398_v14 = vsel %vm375_vm0, %v351_v9, 0  ;;  %v329_v20 = vld [vmem:[%s1460_s18 + $0x8] sm:$0xff]  ;;  %v338_v21 = vld [vmem:[%s1460_s18 + $0x50] sm:$0xff]  ;;  %v339_v22 = vld [vmem:[%s1460_s18 + $0x58] sm:$0xff]  ;;  %v345_v24 = vpack.c.bf16 %v331_v18, %v330_v17  ;;  %v346_v25 = vpack.c.bf16 %v333_v16, %v332_v15 }
  0x12   : > { %1190 = vmatpush3.bf16.msra.mxu0 %v1338_v1  ;;  %1208 = vmatpush3.bf16.xpose.msra.mxu1 %v398_v14  ;;  %v344_v23 = vpack.c.bf16 %v329_v20, %v328_v19  ;;  %v395_v26 = vsel %vm375_vm0, %v350_v12, 0  ;;  %v349_v27 = vpack.c.bf16 %v339_v22, %v338_v21  ;;  %v334_v28 = vld [vmem:[%s1460_s18 + $0x30] sm:$0xff]  ;;  %v335_v29 = vld [vmem:[%s1460_s18 + $0x38] sm:$0xff]  ;;  %v336_v30 = vld [vmem:[%s1460_s18 + $0x40] sm:$0xff] }
  0x13   : > { %1315 = vmatprep.subr.msk.bf16.mxu0 %vm375_vm0, %v351_v9  ;;  %522 = vperm.xlu0 %1335, %v504_v11   ;;  %v337_v31 = vld [vmem:[%s1460_s18 + $0x48] sm:$0xff]  ;;  %v347_v32 = vpack.c.bf16 %v335_v29, %v334_v28  ;;  %v383_v37 = vsel %vm375_vm0, %v346_v25, 0  ;;  %v380_v38 = vsel %vm375_vm0, %v345_v24, 0  ;;  %v1527_v41 = vld [vmem:[%s1648_s3] ss:$0 sm:$0xff] }
  0x14   : > { %1308 = vmatprep.subr.msk.bf16.mxu1 %vm375_vm0, %v350_v12  ;;  %512 = vperm.xlu1 %1336, %v502_v13   ;;  %v348_v33 = vpack.c.bf16 %v337_v31, %v336_v30  ;;  %v392_v34 = vsel %vm375_vm0, %v349_v27, 0  ;;  %v377_v39 = vsel %vm375_vm0, %v344_v23, 0 }
  0x15   : > { %1191 = vmatprep.mubr.msk.bf16.mxu0 %vm375_vm0, %v344_v23  ;;  %v386_v36 = vsel %vm375_vm0, %v347_v32, 0 }
  0x16   : > { %1192 = vmatmul.mubr.msk.bf16.vlgmr.msra.gmra.mxu0 %vm375_vm0, %v345_v24  ;;  %v389_v35 = vsel %vm375_vm0, %v348_v33, 0 }
  0x17   : > { %1195 = vmatprep.mubr.msk.bf16.mxu0 %vm375_vm0, %v346_v25  ;;  %1228 = vmatpush3.bf16.xpose.msra.mxu0 %v398_v14 }
  0x18   : > { %1316 = vmatprep.subr.msk.bf16.mxu0 %vm375_vm0, %v350_v12 }
  0x1a   : > { %1210 = vmatpush3.bf16.xpose.msra.mxu1 %v395_v26 }
  0x1b   : > { %1309 = vmatprep.subr.msk.bf16.mxu1 %vm375_vm0, %v349_v27 }
  0x1e   : > { %1196 = vmatmul.mubr.msk.bf16.gmra.mxu0 %vm375_vm0, %v347_v32 }
  0x1f   : > { %1199 = vmatprep.mubr.msk.bf16.mxu0 %vm375_vm0, %v348_v33  ;;  %1230 = vmatpush3.bf16.xpose.msra.mxu0 %v395_v26 }
  0x20   : > { %1317 = vmatprep.subr.msk.bf16.mxu0 %vm375_vm0, %v349_v27 }
  0x22   : > { %1212 = vmatpush3.bf16.xpose.msra.mxu1 %v392_v34 }
  0x23   : > { %1310 = vmatprep.subr.msk.bf16.mxu1 %vm375_vm0, %v348_v33 }
  0x26   : > { %1200 = vmatmul.mubr.msk.bf16.gmra.mxu0 %vm375_vm0, %v349_v27 }
  0x27   : > { %1203 = vmatprep.mubr.msk.bf16.mxu0 %vm375_vm0, %v350_v12  ;;  %1232 = vmatpush3.bf16.xpose.msra.mxu0 %v392_v34 }
  0x28   : > { %1318 = vmatprep.subr.msk.bf16.mxu0 %vm375_vm0, %v348_v33  ;;  %v1342_v33 = vld [vmem:[%s1651_s6 + $0x8] sm:$0xff]  }
  0x2a   : > { %1214 = vmatpush3.bf16.xpose.msra.mxu1 %v389_v35 }
  0x2b   : > { %1311 = vmatprep.subr.msk.bf16.mxu1 %vm375_vm0, %v347_v32 }
  0x2e   : > { %1204 = vmatmul.mubr.msk.bf16.gmra.mxu0 %vm375_vm0, %v351_v9 }
  0x2f   : > { %1234 = vmatpush3.bf16.xpose.msra.mxu0 %v389_v35 }
  0x30   : > { %1319 = vmatprep.subr.msk.bf16.mxu0 %vm375_vm0, %v347_v32  ;;  %v1341_v32 = vld [vmem:[%s1651_s6] sm:$0xff]  }
  0x31   : > { %1243 = vmatprep.mubr.msk.bf16.mxu0 %vm375_vm0, %v1341_v32 }
  0x32   : > { %1216 = vmatpush3.bf16.xpose.msra.mxu1 %v386_v36 }
  0x33   : > { %1312 = vmatprep.subr.msk.bf16.mxu1 %vm375_vm0, %v346_v25 }
  0x37   : > { %1236 = vmatpush3.bf16.xpose.msra.mxu0 %v386_v36 }
  0x38   : > { %1320 = vmatprep.subr.msk.bf16.mxu0 %vm375_vm0, %v346_v25 }
  0x3a   : > { %1218 = vmatpush3.bf16.xpose.msra.mxu1 %v383_v37 }
  0x3b   : > { %1313 = vmatprep.subr.msk.bf16.mxu1 %vm375_vm0, %v345_v24 }
  0x3f   : > { %1238 = vmatpush3.bf16.xpose.msra.mxu0 %v383_v37 }
  0x40   : > { %1321 = vmatprep.subr.msk.bf16.mxu0 %vm375_vm0, %v345_v24 }
  0x42   : > { %1220 = vmatpush3.bf16.xpose.msra.mxu1 %v380_v38 }
  0x43   : > { %1314 = vmatprep.subr.msk.bf16.mxu1 %vm375_vm0, %v344_v23 }
  0x47   : > { %1240 = vmatpush3.bf16.xpose.msra.mxu0 %v380_v38 }
  0x48   : > { %1322 = vmatprep.subr.msk.bf16.mxu0 %vm375_vm0, %v344_v23 }
  0x4a   : > { %1222 = vmatpush3.bf16.xpose.msra.mxu1 %v377_v39 }
  0x4f   : > { %1242 = vmatpush3.bf16.xpose.msra.mxu0 %v377_v39 }
  0x51   : > { %1224 = vmatmul.mubr.msk.bf16.vlgmr.msra.gmra.mxu1 %vm375_vm0, %v1340_v40 }
  0x56   : > { %1244 = vmatmul.mubr.msk.bf16.vlgmr.msra.gmra.mxu0 %vm375_vm0, %v1342_v33 }
  0x89   : > { %v518_v57 = vpop.permute.xlu0 %517 }
  0x8a   : > { %v508_v59 = vpop.permute.xlu1 %507 }
  0x8e   : > { %v523_v63 = vpop.permute.xlu0 %522 }
  0x8f   : > { %v513_v3 = vpop.permute.xlu1 %512 }
  0xd6   : > { %v1193_v42 = vpop.f32.mrf.mxu0 }
  0xd7   : > { %v443_v43 = vadd.f32 %v1193_v42, %v1527_v41 }
  0xd8   : > { %v434_v44 = vpop.f32.mrf.mxu0 }
  0xd9   : > { %v435_v46 = vadd.f32 %v1527_v41, %v434_v44 }
  0xda   : > { %v1194_v45 = vpop.f32.mrf.mxu0 }
  0xdb   : > { %v446_v47 = vadd.f32 %v1194_v45, %v1527_v41 }
  0xdc   : > { %v437_v48 = vpop.f32.mrf.mxu0 }
  0xdd   : > { %v660_v49 = vpack.c.bf16 %v446_v47, %v443_v43  ;;  %v438_v50 = vadd.f32 %v1527_v41, %v437_v48 }
  0xde   : > { %v1197_v52 = vpop.f32.mrf.mxu0 }
  0xdf   : > { %v659_v51 = vpack.c.bf16 %v438_v50, %v435_v46  ;;  %v459_v17 = vadd.f32 %v1197_v52, %v1527_v41  ;;  %v1386_v50 = vmov 0.0   ;;  %v980_v52 = vld [vmem:[%s1652_s7 + $0x10] sm:$0xff] }
  0xe0   : > { %v450_v53 = vpop.f32.mrf.mxu0  ;;  %1267 = vmatprep.subr.bf16.mxu0 %v1386_v50  ;;  %1283 = vmatprep.mubr.msk.bf16.mxu0 %vm1387_vm1, %v1386_v50 }
  0xe1   : > { %1251 = vmatprep.mubr.msk.bf16.mxu1 %vm375_vm0, %v659_v51  ;;  %v451_v10 = vadd.f32 %v1527_v41, %v450_v53  ;;  %v978_v51 = vld [vmem:[%s1652_s7] sm:$0xff]  ;;  %v981_v53 = vld [vmem:[%s1652_s7 + $0x18] sm:$0xff] }
  0xe2   : > { %v1198_v54 = vpop.f32.mrf.mxu0 }
  0xe3   : > { %v462_v18 = vadd.f32 %v1198_v54, %v1527_v41  ;;  %v979_v54 = vld [vmem:[%s1652_s7 + $0x8] sm:$0xff] }
  0xe4   : > { %v453_v55 = vpop.f32.mrf.mxu0 }
  0xe5   : > { %v454_v11 = vadd.f32 %v1527_v41, %v453_v55  ;;  %v662_v21 = vpack.c.bf16 %v462_v18, %v459_v17 }
  0xe6   : > { %v1201_v56 = vpop.f32.mrf.mxu0 }
  0xe7   : > { %v661_v13 = vpack.c.bf16 %v454_v11, %v451_v10  ;;  %v475_v25 = vadd.f32 %v1201_v56, %v1527_v41 }
  0xe8   : > { %v466_v58 = vpop.f32.mrf.mxu0 }
  0xe9   : > { %v467_v15 = vadd.f32 %v1527_v41, %v466_v58 }
  0xea   : > { %v1202_v62 = vpop.f32.mrf.mxu0 }
  0xeb   : > { %v478_v26 = vadd.f32 %v1202_v62, %v1527_v41 }
  0xec   : > { %v469_v8 = vpop.f32.mrf.mxu0 }
  0xed   : > { %v470_v16 = vadd.f32 %v1527_v41, %v469_v8  ;;  %v664_v28 = vpack.c.bf16 %v478_v26, %v475_v25 }
  0xee   : > { %v1205_v12 = vpop.f32.mrf.mxu0 }
  0xef   : > { %v663_v20 = vpack.c.bf16 %v470_v16, %v467_v15  ;;  %v491_v29 = vadd.f32 %v1205_v12, %v1527_v41 }
  0xf0   : > { %v482_v14 = vpop.f32.mrf.mxu0 }
  0xf1   : > { %v483_v23 = vadd.f32 %v1527_v41, %v482_v14 }
  0xf2   : > { %v1206_v19 = vpop.f32.mrf.mxu0 }
  0xf3   : > { %v494_v30 = vadd.f32 %v1206_v19, %v1527_v41 }
  0xf4   : > { %v485_v22 = vpop.f32.mrf.mxu0 }
  0xf5   : > { %v486_v24 = vadd.f32 %v1527_v41, %v485_v22  ;;  %v666_v31 = vpack.c.bf16 %v494_v30, %v491_v29 }
  0xf7   : > { %v665_v27 = vpack.c.bf16 %v486_v24, %v483_v23 }
 0x111   : > { %v1225_v60 = vpop.f32.mrf.mxu1 }
 0x112   : > { %v584_v1 = vadd.f32 %v1225_v60, %v518_v57 }
 0x113   : > { %v575_v61 = vpop.f32.mrf.mxu1 }
 0x114   : > { %v576_v5 = vadd.f32 %v575_v61, %v508_v59 }
 0x115   : > { %v1226_v0 = vpop.f32.mrf.mxu1 }
 0x116   : > { %v587_v2 = vadd.f32 %v1226_v0, %v523_v63  ;;  %v1607_v55 = vpop.f32.mrf.mxu0 }
 0x117   : > { %v578_v4 = vpop.f32.mrf.mxu1 }
 0x118   : > { %v668_v6 = vpack.c.bf16 %v587_v2, %v584_v1  ;;  %v579_v7 = vadd.f32 %v578_v4, %v513_v3  ;;  %v644_v56 = vpop.f32.mrf.mxu0 }
 0x11a   : > { %v667_v9 = vpack.c.bf16 %v579_v7, %v576_v5  ;;  %1247 = vmatprep.subr.bf16.mxu1 %v668_v6  ;;  %v1609_v57 = vpop.f32.mrf.mxu0 }
 0x11b   : > { %1248 = vmatpush3.bf16.msra.mxu1 %v668_v6  ;;  %v920_v58 = vpack.c.bf16 %v1609_v57, %v1607_v55 }
 0x11c   : > { %1249 = vmatprep.subr.bf16.mxu1 %v667_v9  ;;  %v647_v59 = vpop.f32.mrf.mxu0 }
 0x11d   : > { %v919_v60 = vpack.c.bf16 %v647_v59, %v644_v56 }
 0x11f   : > { %1250 = vmatpush3.bf16.msra.mxu1 %v667_v9 }
 0x122   : > { %1252 = vmatmul.mubr.msk.bf16.vlgmr.msra.gmra.mxu1 %vm375_vm0, %v660_v49 }
 0x123   : > { %1255 = vmatprep.mubr.msk.bf16.mxu1 %vm375_vm0, %v661_v13 }
 0x12a   : > { %1256 = vmatmul.mubr.msk.bf16.gmra.mxu1 %vm375_vm0, %v662_v21 }
 0x12b   : > { %1259 = vmatprep.mubr.msk.bf16.mxu1 %vm375_vm0, %v663_v20 }
 0x132   : > { %1260 = vmatmul.mubr.msk.bf16.gmra.mxu1 %vm375_vm0, %v664_v28 }
 0x133   : > { %1263 = vmatprep.mubr.msk.bf16.mxu1 %vm375_vm0, %v665_v27 }
 0x13a   : > { %1264 = vmatmul.mubr.msk.bf16.gmra.mxu1 %vm375_vm0, %v666_v31 }
 0x13b   : > { %1303 = vmatprep.mubr.bf16.mxu1 %v919_v60 }
 0x1e2   : > { %v1561_v34 = vpop.f32.mrf.mxu1 }
 0x1e4   : > { %v1563_v35 = vpop.f32.mrf.mxu1 }
 0x1e6   : > { %v1565_v36 = vpop.f32.mrf.mxu1 }
 0x1e8   : > { %v1567_v37 = vpop.f32.mrf.mxu1 }
 0x1ea   : > { %v1569_v38 = vpop.f32.mrf.mxu1 }
 0x1ec   : > { %v1571_v39 = vpop.f32.mrf.mxu1 }
 0x1ee   : > { %v1573_v40 = vpop.f32.mrf.mxu1 }
 0x1f0   : > { %v1575_v41 = vpop.f32.mrf.mxu1 }
 0x1f2   : > { %v1577_v42 = vpop.f32.mrf.mxu1 }
 0x1f4   : > { %v1579_v43 = vpop.f32.mrf.mxu1 }
 0x1f6   : > { %v1262_v44 = vpop.f32.mrf.mxu1 }
 0x1f8   : > { %v1581_v45 = vpop.f32.mrf.mxu1 }
 0x1fa   : > { %v1265_v46 = vpop.f32.mrf.mxu1 }
 0x1fb   : > { %818 = vmax.xlane.f32.xlu0 %v1265_v46 }
 0x1fc   : > { %v775_v47 = vpop.f32.mrf.mxu1 }
 0x1fe   : > { %v1266_v48 = vpop.f32.mrf.mxu1 }
 0x1ff   : > { %814 = vmax.xlane.f32.xlu0 %v775_v47  ;;  %820 = vmax.xlane.f32.xlu1 %v1266_v48 }
 0x200   : > { %v778_v49 = vpop.f32.mrf.mxu1 }
 0x203   : > { %810 = vmax.xlane.f32.xlu1 %v1577_v42  ;;  %816 = vmax.xlane.f32.xlu0 %v778_v49 }
 0x207   : > { %806 = vmax.xlane.f32.xlu1 %v1579_v43  ;;  %812 = vmax.xlane.f32.xlu0 %v1262_v44 }
 0x20b   : > { %802 = vmax.xlane.f32.xlu1 %v1569_v38  ;;  %808 = vmax.xlane.f32.xlu0 %v1581_v45 }
 0x20f   : > { %798 = vmax.xlane.f32.xlu1 %v1571_v39  ;;  %804 = vmax.xlane.f32.xlu0 %v1573_v40 }
 0x213   : > { %794 = vmax.xlane.f32.xlu1 %v1561_v34  ;;  %800 = vmax.xlane.f32.xlu0 %v1575_v41 }
 0x217   : > { %790 = vmax.xlane.f32.xlu1 %v1563_v35  ;;  %796 = vmax.xlane.f32.xlu0 %v1565_v36 }
 0x21b   : > { %792 = vmax.xlane.f32.xlu0 %v1567_v37 }
 0x228   : > { %984 = vperm.xlu1 %1336, %v978_v51  }
 0x22c   : > { %994 = vperm.xlu1 %1336, %v980_v52  }
 0x230   : > { %999 = vperm.xlu1 %1336, %v981_v53  }
 0x231   : > { %989 = vperm.xlu0 %1335, %v979_v54  }
 0x284   : > { %v819_v61 = vpop.xlane.xlu0 %818 }
 0x285   : > { %v836_v62 = vsub.f32 %v1265_v46, %v819_v61 }
 0x287   : > { %v866_v1 = vmul.f32 1.442695, %v836_v62 }
 0x288   : > { %v815_v63 = vpop.xlane.xlu0 %814  ;;  %v821_v0 = vpop.xlane.xlu1 %820 }
 0x289   : > { %v834_v2 = vsub.f32 %v775_v47, %v815_v63  ;;  %v837_v3 = vsub.f32 %v1266_v48, %v821_v0  ;;  %1343 = vpow2.f32 %v866_v1 }
 0x28b   : > { %v868_v4 = vmul.f32 1.442695, %v837_v3  ;;  %v862_v6 = vmul.f32 1.442695, %v834_v2 }
 0x28c   : > { %v817_v5 = vpop.xlane.xlu0 %816  ;;  %v811_v7 = vpop.xlane.xlu1 %810 }
 0x28d   : > { %v835_v8 = vsub.f32 %v778_v49, %v817_v5  ;;  %1345 = vpow2.f32 %v868_v4  ;;  %v832_v10 = vsub.f32 %v1577_v42, %v811_v7 }
 0x28e   : > { %1347 = vpow2.f32 %v862_v6 }
 0x28f   : > { %v864_v9 = vmul.f32 1.442695, %v835_v8  ;;  %v858_v14 = vmul.f32 1.442695, %v832_v10 }
 0x290   : > { %v813_v11 = vpop.xlane.xlu0 %812  ;;  %v807_v16 = vpop.xlane.xlu1 %806 }
 0x291   : > { %v833_v12 = vsub.f32 %v1262_v44, %v813_v11  ;;  %1349 = vpow2.f32 %v864_v9  ;;  %v830_v18 = vsub.f32 %v1579_v43, %v807_v16  ;;  %v1388_v9 = vmov 1065369472  }
 0x293   : > { %v860_v13 = vmul.f32 1.442695, %v833_v12  ;;  %v854_v23 = vmul.f32 1.442695, %v830_v18  ;;  %v970_v12 = vlaneseq }
 0x294   : > { %v809_v15 = vpop.xlane.xlu0 %808  ;;  %v803_v25 = vpop.xlane.xlu1 %802 }
 0x295   : > { %1351 = vpow2.f32 %v860_v13  ;;  %v831_v17 = vsub.f32 %v1581_v45, %v809_v15  ;;  %v828_v29 = vsub.f32 %v1569_v38, %v803_v25 }
 0x296   : > { %1353 = vpow2.f32 %v858_v14  ;;  %v1344_v19 = vpop.eup %1343 }
 0x297   : > { %v856_v20 = vmul.f32 1.442695, %v831_v17  ;;  %v850_v42 = vmul.f32 1.442695, %v828_v29  ;;  %v971_v17 = vshrl.u32 %v970_v12, 7  ;;  %v1009_v29 = vld [vmem:[%s320_s24 + $0x18] sm:$0xff] }
 0x298   : > { %v805_v22 = vpop.xlane.xlu0 %804  ;;  %v799_v44 = vpop.xlane.xlu1 %798 }
 0x299   : > { %1355 = vpow2.f32 %v856_v20  ;;  %v829_v27 = vsub.f32 %v1573_v40, %v805_v22  ;;  %v826_v46 = vsub.f32 %v1571_v39, %v799_v44  ;;  %v972_v18 = vsub.s32 0, %v971_v17  ;;  %v1008_v22 = vld [vmem:[%s320_s24 + $0x10] sm:$0xff] }
 0x29a   : > { %v1346_v21 = vpop.eup %1345  ;;  %1357 = vpow2.f32 %v854_v23 }
 0x29b   : > { %v877_v24 = vpack.c.bf16 %v1346_v21, %v1344_v19  ;;  %v1348_v26 = vpop.eup %1347  ;;  %v852_v31 = vmul.f32 1.442695, %v829_v27  ;;  %v846_v49 = vmul.f32 1.442695, %v826_v46 }
 0x29c   : > { %v801_v33 = vpop.xlane.xlu0 %800  ;;  %v795_v52 = vpop.xlane.xlu1 %794 }
 0x29d   : > { %1268 = vmatpush3.bf16.xpose.msra.mxu0 %v877_v24  ;;  %1287 = vmatprep.subr.bf16.mxu1 %v877_v24  ;;  %1359 = vpow2.f32 %v852_v31  ;;  %v827_v40 = vsub.f32 %v1575_v41, %v801_v33  ;;  %v824_v54 = vsub.f32 %v1561_v34, %v795_v52 }
 0x29e   : > { %v1350_v28 = vpop.eup %1349  ;;  %1288 = vmatpush3.bf16.xpose.msra.mxu1 %v877_v24  ;;  %1269 = vmatprep.subr.bf16.mxu0 %v1386_v50  ;;  %1361 = vpow2.f32 %v850_v42 }
 0x29f   : > { %v876_v30 = vpack.c.bf16 %v1350_v28, %v1348_v26  ;;  %v848_v38 = vmul.f32 1.442695, %v827_v40  ;;  %v842_v60 = vmul.f32 1.442695, %v824_v54  ;;  %v1006_v28 = vld [vmem:[%s320_s24] sm:$0xff] }
 0x2a0   : > { %v797_v48 = vpop.xlane.xlu0 %796  ;;  %v791_v62 = vpop.xlane.xlu1 %790 }
 0x2a1   : > { %1289 = vmatprep.subr.bf16.mxu1 %v876_v30  ;;  %1363 = vpow2.f32 %v848_v38  ;;  %v825_v53 = vsub.f32 %v1565_v36, %v797_v48  ;;  %v822_v0 = vsub.f32 %v1563_v35, %v791_v62 }
 0x2a2   : > { %v1352_v32 = vpop.eup %1351  ;;  %1365 = vpow2.f32 %v846_v49 }
 0x2a3   : > { %v1354_v43 = vpop.eup %1353  ;;  %v844_v39 = vmul.f32 1.442695, %v825_v53  ;;  %v838_v2 = vmul.f32 1.442695, %v822_v0 }
 0x2a4   : > { %v875_v45 = vpack.c.bf16 %v1352_v32, %v1354_v43  ;;  %v793_v59 = vpop.xlane.xlu0 %792  ;;  %v985_v15 = vpop.permute.xlu1 %984 }
 0x2a5   : > { %1270 = vmatpush3.bf16.xpose.msra.mxu0 %v876_v30  ;;  %1367 = vpow2.f32 %v844_v39  ;;  %v823_v63 = vsub.f32 %v1567_v37, %v793_v59 }
 0x2a6   : > { %1290 = vmatpush3.bf16.xpose.msra.mxu1 %v876_v30  ;;  %1271 = vmatprep.subr.bf16.mxu0 %v1386_v50  ;;  %v1356_v47 = vpop.eup %1355  ;;  %1369 = vpow2.f32 %v842_v60  ;;  %v1007_v30 = vld [vmem:[%s320_s24 + $0x8] sm:$0xff] }
 0x2a7   : > { %1291 = vmatprep.subr.bf16.mxu1 %v875_v45  ;;  %v1358_v51 = vpop.eup %1357  ;;  %v840_v34 = vmul.f32 1.442695, %v823_v63 }
 0x2a8   : > { %v874_v41 = vpack.c.bf16 %v1356_v47, %v1358_v51  ;;  %v995_v19 = vpop.permute.xlu1 %994 }
 0x2a9   : > { %1371 = vpow2.f32 %v840_v34 }
 0x2aa   : > { %v1360_v56 = vpop.eup %1359  ;;  %1373 = vpow2.f32 %v838_v2 }
 0x2ab   : > { %v1362_v61 = vpop.eup %1361 }
 0x2ac   : > { %v873_v36 = vpack.c.bf16 %v1360_v56, %v1362_v61  ;;  %v1000_v26 = vpop.permute.xlu1 %999  ;;  %v990_v27 = vpop.permute.xlu0 %989 }
 0x2ad   : > { %1272 = vmatpush3.bf16.xpose.msra.mxu0 %v875_v45 }
 0x2ae   : > { %1292 = vmatpush3.bf16.xpose.msra.mxu1 %v875_v45  ;;  %1273 = vmatprep.subr.bf16.mxu0 %v1386_v50  ;;  %v1364_v1 = vpop.eup %1363 }
 0x2af   : > { %1293 = vmatprep.subr.bf16.mxu1 %v874_v41  ;;  %v1366_v3 = vpop.eup %1365 }
 0x2b0   : > { %v872_v4 = vpack.c.bf16 %v1364_v1, %v1366_v3 }
 0x2b2   : > { %v1368_v37 = vpop.eup %1367 }
 0x2b3   : > { %v1370_v5 = vpop.eup %1369 }
 0x2b4   : > { %v871_v6 = vpack.c.bf16 %v1368_v37, %v1370_v5 }
 0x2b5   : > { %1274 = vmatpush3.bf16.xpose.msra.mxu0 %v874_v41 }
 0x2b6   : > { %1294 = vmatpush3.bf16.xpose.msra.mxu1 %v874_v41  ;;  %1275 = vmatprep.subr.bf16.mxu0 %v1386_v50  ;;  %v1372_v35 = vpop.eup %1371 }
 0x2b7   : > { %1295 = vmatprep.subr.bf16.mxu1 %v873_v36  ;;  %v1374_v7 = vpop.eup %1373 }
 0x2b8   : > { %v870_v8 = vpack.c.bf16 %v1372_v35, %v1374_v7 }
 0x2bd   : > { %1276 = vmatpush3.bf16.xpose.msra.mxu0 %v873_v36 }
 0x2be   : > { %1296 = vmatpush3.bf16.xpose.msra.mxu1 %v873_v36  ;;  %1277 = vmatprep.subr.bf16.mxu0 %v1386_v50 }
 0x2bf   : > { %1297 = vmatprep.subr.bf16.mxu1 %v872_v4 }
 0x2c5   : > { %1278 = vmatpush3.bf16.xpose.msra.mxu0 %v872_v4 }
 0x2c6   : > { %1298 = vmatpush3.bf16.xpose.msra.mxu1 %v872_v4  ;;  %1279 = vmatprep.subr.bf16.mxu0 %v1386_v50 }
 0x2c7   : > { %1299 = vmatprep.subr.bf16.mxu1 %v871_v6 }
 0x2cd   : > { %1280 = vmatpush3.bf16.xpose.msra.mxu0 %v871_v6 }
 0x2ce   : > { %1300 = vmatpush3.bf16.xpose.msra.mxu1 %v871_v6  ;;  %1281 = vmatprep.subr.bf16.mxu0 %v1386_v50 }
 0x2cf   : > { %1301 = vmatprep.subr.bf16.mxu1 %v870_v8 }
 0x2d5   : > { %1282 = vmatpush3.bf16.xpose.msra.mxu0 %v870_v8 }
 0x2d6   : > { %1302 = vmatpush3.bf16.xpose.msra.mxu1 %v870_v8 }
 0x2dc   : > { %1284 = vmatmul.mubr.bf16.vlgmr.msra.gmra.mxu0 %v1388_v9 }
 0x2dd   : > { %1304 = vmatmul.mubr.bf16.vlgmr.msra.gmra.mxu1 %v920_v58 }
 0x39c   : > { %v912_v10 = vpop.f32.mrf.mxu0 }
 0x39d   : > { %1375 = vrcp.f32 %v912_v10  ;;  %v1305_v13 = vpop.f32.mrf.mxu1 }
 0x39e   : > { %v1285_v11 = vpop.f32.mrf.mxu0 }
 0x39f   : > { %v955_v50 = vpop.f32.mrf.mxu1 }
 0x3a0   : > { %v915_v14 = vpop.f32.mrf.mxu0 }
 0x3a1   : > { %v1306_v20 = vpop.f32.mrf.mxu1 }
 0x3a2   : > { %v1286_v16 = vpop.f32.mrf.mxu0 }
 0x3a3   : > { %v958_v57 = vpop.f32.mrf.mxu1 }
 0x3aa   : > { %v1376_v21 = vpop.eup %1375 }
 0x3ab   : > { %v973_v55 = vrot.slane %v1376_v21, %v972_v18 }
 0x3ad   : > { %v976_v58 = vmul.f32 %v1305_v13, %v973_v55  ;;  %v974_v23 = vmul.f32 %v973_v55, %v955_v50  ;;  %v977_v24 = vmul.f32 %v1306_v20, %v973_v55  ;;  %v975_v25 = vmul.f32 %v973_v55, %v958_v57 }
 0x3af   : > { %v1004_v31 = vadd.f32 %v995_v19, %v976_v58  ;;  %v1002_v32 = vadd.f32 %v985_v15, %v974_v23  ;;  %v1005_v33 = vadd.f32 %v1000_v26, %v977_v24  ;;  %v1003_v42 = vadd.f32 %v990_v27, %v975_v25 }
 0x3b1   : > { %v1012_v43 = vadd.f32 %v1008_v22, %v1004_v31  ;;  %v1010_v44 = vadd.f32 %v1006_v28, %v1002_v32  ;;  %v1013_v40 = vadd.f32 %v1009_v29, %v1005_v33  ;;  %v1011_v45 = vadd.f32 %v1007_v30, %v1003_v42 }
 0x3b3   : > { %1016 = vst [vmem:[%s325_s26 + $0x10] sm:$0xff] %v1012_v43  ;;  %1014 = vst [vmem:[%s325_s26] sm:$0xff] %v1010_v44 }
 0x3b4   : > { %1017 = vst [vmem:[%s325_s26 + $0x18] sm:$0xff] %v1013_v40  ;;  %1015 = vst [vmem:[%s325_s26 + $0x8] sm:$0xff] %v1011_v45 }
 0x3b5 PF: > { %s18_s27 = sadd.s32 1, %s1383_s27  }
 0x3b6   : > { %p15_p4 = scmp.ge.s32.totalorder %s18_s27, 4  }
 0x3b8   :  { %17 = sbr.rel (!%p15_p4) target bundleno = 1 (0x1), region = 85 }

</bundles_post_ra>
